<compile_context>
chip_gen: v6e
topology: v6e:2x2x1
jax: 0.10.0
libtpu: 0.0.40
codegen_flags: <defaults>
</compile_context>

<pallas_src>
import functools

import jax
import jax.numpy as jnp
from jax import lax
from jax.experimental import pallas as pl
from jax.experimental.pallas import tpu as pltpu


def _channel_attention_kernel(x_ref, w1t_ref, w2t_ref, o_ref, sum_acc, max_acc,
                              *, hw_total, hw_tile, sub, n_sub, needs_mask):
    # x_ref: (B, C, HW_TILE) ; w1t: (C, Cr) ; w2t: (Cr, C) ; o: (B, C)
    # sum_acc / max_acc: (B, C) f32 scratch, persistent across the HW grid axis.
    k = pl.program_id(1)
    n_k = pl.num_programs(1)

    @pl.when(k == 0)
    def _init():
        sum_acc[...] = jnp.zeros_like(sum_acc)
        max_acc[...] = jnp.full_like(max_acc, -jnp.inf)

    b = sum_acc.shape[0]
    c = sum_acc.shape[1]
    neg_fill = jnp.array(-jnp.inf, dtype=x_ref.dtype)

    # Single pass over the block: running f32 sum + running max per sub-chunk.
    def body(j, carry):
        s, m = carry
        off = pl.multiple_of(j * sub, sub)
        chunk = x_ref[:, :, pl.ds(off, sub)]                    # (B, C, sub)
        if needs_mask:
            lane = lax.broadcasted_iota(jnp.int32, chunk.shape, 2)
            valid = (k * hw_tile + off + lane) < hw_total
            # Padded lanes are zero (neutral for the sum); mask them for max.
            chunk_max = jnp.where(valid, chunk, neg_fill)
        else:
            chunk_max = chunk
        s = s + jnp.sum(chunk, axis=-1, dtype=jnp.float32)
        m = jnp.maximum(m, jnp.max(chunk_max, axis=-1).astype(jnp.float32))
        return s, m

    init = (jnp.zeros((b, c), jnp.float32),
            jnp.full((b, c), -jnp.inf, jnp.float32))
    s, m = lax.fori_loop(0, n_sub, body, init, unroll=(n_sub <= 8))

    sum_acc[...] += s
    max_acc[...] = jnp.maximum(max_acc[...], m)

    @pl.when(k == n_k - 1)
    def _finalize():
        avg = sum_acc[...] * (1.0 / hw_total)                   # (B, C) f32
        mx = max_acc[...]                                       # (B, C) f32
        pooled = jnp.concatenate([avg, mx], axis=0)             # (2B, C)
        w1t = w1t_ref[...].astype(jnp.float32)                  # (C, Cr)
        w2t = w2t_ref[...].astype(jnp.float32)                  # (Cr, C)
        # Shared MLP applied to both pooled vectors in one pair of matmuls.
        h = jnp.maximum(
            jnp.dot(pooled, w1t, preferred_element_type=jnp.float32), 0.0)
        y = jnp.dot(h, w2t, preferred_element_type=jnp.float32)  # (2B, C)
        o_ref[...] = jax.nn.sigmoid(y[:b] + y[b:]).astype(o_ref.dtype)


def channel_attention(x, w1, w2):
    """x: (N, C, H, W) NCHW.  w1: (C//r, C) (fc1 1x1 conv weight, squeezed).
    w2: (C, C//r) (fc2).  Returns (N, C, 1, 1) attention weights."""
    N, C, H, W = x.shape
    Cr = w1.shape[0]
    HW = H * W
    itemsize = jnp.dtype(x.dtype).itemsize

    # ---- generation-aware sizing -------------------------------------------
    vmem_cap = 64 * 1024 * 1024            # conservative default (v7x per-TC)
    try:
        info = pltpu.get_tpu_info()
        vmem_cap = int(getattr(info, "vmem_capacity_bytes", vmem_cap))
    except Exception:
        pass
    small_vmem = vmem_cap < (96 * 1024 * 1024)       # v7x-class 64 MiB VMEM
    target_block_bytes = (8 if small_vmem else 20) * 1024 * 1024

    two_tensorcores = False
    try:
        kind = jax.devices()[0].device_kind.lower()
        two_tensorcores = ("v7" in kind) or ("7x" in kind)
    except Exception:
        pass

    # ---- choose tiling -------------------------------------------------------
    hw_128 = ((HW + 127) // 128) * 128               # lane-align streaming dim
    bytes_per_batch = C * hw_128 * itemsize

    n_hw = max(1, -(-bytes_per_batch // target_block_bytes))    # ceil
    hw_tile = -(-(hw_128 // 128) // n_hw) * 128                 # 128-multiple
    hw_pad = hw_tile * n_hw
    needs_mask = hw_pad != HW

    if n_hw == 1:
        per_batch = C * hw_tile * itemsize
        b_tile = max(1, min(N, target_block_bytes // max(per_batch, 1)))
        if two_tensorcores and N >= 2:
            # keep >=2 batch steps so both v7x TensorCores get work
            b_tile = min(b_tile, (N + 1) // 2)
        if 8 < b_tile < N:
            b_tile = (b_tile // 8) * 8               # sublane-friendly blocks
    else:
        b_tile = 1
    n_b = -(-N // b_tile)

    # inner-chunk size for the single-pass running sum/max
    if hw_tile % 512 == 0:
        sub = 512
    elif hw_tile % 256 == 0:
        sub = 256
    else:
        sub = 128
    n_sub = hw_tile // sub

    # ---- prepare operands ----------------------------------------------------
    x_flat = x.reshape(N, C, HW)
    if hw_pad != HW:
        # zeros are neutral for the running sum; the kernel masks padded lanes
        # to -inf for the running max.
        x_flat = jnp.pad(x_flat, ((0, 0), (0, 0), (0, hw_pad - HW)))
    w1t = jnp.asarray(w1).T          # (C, Cr) — pre-transposed, no in-kernel XLU
    w2t = jnp.asarray(w2).T          # (Cr, C)

    # ---- VMEM budget ---------------------------------------------------------
    block_bytes = b_tile * C * hw_tile * itemsize
    fixed_bytes = (2 * 2 * C * Cr * itemsize        # double-buffered weights
                   + 2 * b_tile * C * itemsize      # output block
                   + 2 * b_tile * C * 4             # scratch accumulators
                   + (2 << 20))                     # slack
    vmem_budget = int(0.85 * vmem_cap)
    total_steps = n_b * n_hw
    use_triple = (3 * block_bytes + fixed_bytes) <= vmem_budget and total_steps >= 4
    n_buffers = 3 if use_triple else 2
    vmem_limit = int(min(max(n_buffers * block_bytes + fixed_bytes,
                             16 * 1024 * 1024), vmem_budget))

    x_index_map = lambda bi, ki: (bi, 0, ki)
    x_spec = pl.BlockSpec((b_tile, C, hw_tile), x_index_map)
    if use_triple:
        try:
            x_spec = pl.BlockSpec((b_tile, C, hw_tile), x_index_map,
                                  pipeline_mode=pl.Buffered(3))
        except TypeError:
            pass

    kernel = functools.partial(
        _channel_attention_kernel,
        hw_total=HW, hw_tile=hw_tile, sub=sub, n_sub=n_sub, needs_mask=needs_mask)

    cost = pl.CostEstimate(
        flops=int(2 * (2 * N) * C * Cr * 2 + 2 * N * C * hw_pad),
        transcendentals=int(N * C),
        bytes_accessed=int(N * C * hw_pad * itemsize
                           + 2 * C * Cr * itemsize + N * C * itemsize))

    out = pl.pallas_call(
        kernel,
        out_shape=jax.ShapeDtypeStruct((N, C), x.dtype),
        grid_spec=pltpu.PrefetchScalarGridSpec(
            num_scalar_prefetch=0,
            grid=(n_b, n_hw),
            in_specs=[
                x_spec,
                pl.BlockSpec((C, Cr), lambda bi, ki: (0, 0)),
                pl.BlockSpec((Cr, C), lambda bi, ki: (0, 0)),
            ],
            out_specs=pl.BlockSpec((b_tile, C), lambda bi, ki: (bi, 0)),
            scratch_shapes=[pltpu.VMEM((b_tile, C), jnp.float32),
                            pltpu.VMEM((b_tile, C), jnp.float32)],
        ),
        compiler_params=pltpu.CompilerParams(
            dimension_semantics=("parallel", "arbitrary"),
            vmem_limit_bytes=vmem_limit,
        ),
        cost_estimate=cost,
    )(x_flat, w1t, w2t)

    return out.reshape(N, C, 1, 1)


def channel_attention_ref(x, w1, w2):
    # Pure-JAX reference mirroring the PyTorch forward.
    avg = jnp.mean(x, axis=(2, 3))          # (N, C)
    mx = jnp.max(x, axis=(2, 3))            # (N, C)

    def mlp(v):
        h = jnp.maximum(v @ w1.T, 0.0)
        return h @ w2.T

    out = jax.nn.sigmoid(mlp(avg) + mlp(mx))
    N, C = avg.shape
    return out.reshape(N, C, 1, 1)


if __name__ == "__main__":
    # Shapes consistent with ChannelAttention(in_planes=64, ratio=16).
    N, C, H, W = 2, 64, 16, 16
    ratio = 16
    Cr = C // ratio

    key = jax.random.PRNGKey(0)
    kx, k1, k2 = jax.random.split(key, 3)

    x = jax.random.normal(kx, (N, C, H, W), dtype=jnp.float32)
    # Deterministic parameter init (kaiming-uniform-ish scale for 1x1 convs).
    w1 = jax.random.uniform(k1, (Cr, C), jnp.float32, -1.0, 1.0) * (1.0 / (C ** 0.5))
    w2 = jax.random.uniform(k2, (C, Cr), jnp.float32, -1.0, 1.0) * (1.0 / (Cr ** 0.5))

    out = jax.block_until_ready(channel_attention(x, w1, w2))
    ref = channel_attention_ref(x, w1, w2)
    assert out.shape == (N, C, 1, 1)
    assert jnp.allclose(out, ref, atol=1e-5, rtol=1e-5), "mismatch vs reference"

    # Also exercise the lane-padded / masked-max path (HW % 128 != 0).
    x2 = jax.random.normal(kx, (N, C, 7, 7), dtype=jnp.float32)
    out2 = jax.block_until_ready(channel_attention(x2, w1, w2))
    ref2 = channel_attention_ref(x2, w1, w2)
    assert jnp.allclose(out2, ref2, atol=1e-5, rtol=1e-5), "mismatch (padded HW)"

    print("KERNEL_OK")
</pallas_src>

<mosaic_0001>
module attributes {stable_mosaic.version = 11 : i64} {
  func.func @_channel_attention_kernel(%arg0: i32, %arg1: i32, %arg2: memref<2x64x256xf32, #tpu.memory_space<vmem>>, %arg3: memref<64x4xf32, #tpu.memory_space<vmem>>, %arg4: memref<4x64xf32, #tpu.memory_space<vmem>>, %arg5: memref<2x64xf32, #tpu.memory_space<vmem>>, %arg6: memref<2x64xf32, #tpu.memory_space<vmem>>, %arg7: memref<2x64xf32, #tpu.memory_space<vmem>>) attributes {dimension_semantics = [#tpu.dimension_semantics<parallel>, #tpu.dimension_semantics<arbitrary>], iteration_bounds = array<i64: 1, 1>, scalar_prefetch = 0 : i64, scratch_operands = 2 : i64, tpu.core_type = #tpu.core_type<tc>, window_params = [{transform_indices = @transform_0, window_bounds = array<i64: 2, 64, 256>}, {pipeline_mode = #tpu.pipeline_mode<synchronous>, transform_indices = @transform_1, window_bounds = array<i64: 64, 4>}, {pipeline_mode = #tpu.pipeline_mode<synchronous>, transform_indices = @transform_2, window_bounds = array<i64: 4, 64>}, {transform_indices = @transform_3, window_bounds = array<i64: 2, 64>}]} {
    %c0_i32 = arith.constant 0 : i32
    %0 = arith.cmpi eq, %arg1, %c0_i32 : i32
    %1 = arith.extui %0 : i1 to i32
    %c0_i32_0 = arith.constant 0 : i32
    %2 = arith.cmpi ne, %1, %c0_i32_0 : i32
    scf.if %2 {
      %cst_16 = arith.constant 0.000000e+00 : f32
      %22 = vector.broadcast %cst_16 : f32 to vector<2x64xf32>
      %c0_17 = arith.constant 0 : index
      %c0_18 = arith.constant 0 : index
      %23 = vector.load %arg6[%c0_17, %c0_18] : memref<2x64xf32, #tpu.memory_space<vmem>>, vector<2x64xf32>
      tpu.vector_store %arg6[%c0_17, %c0_18], %22 {strides = array<i32>} : memref<2x64xf32, #tpu.memory_space<vmem>>, vector<2x64xf32>,
      %cst_19 = arith.constant 0xFF800000 : f32
      %24 = vector.broadcast %cst_19 : f32 to vector<2x64xf32>
      %c0_20 = arith.constant 0 : index
      %c0_21 = arith.constant 0 : index
      %25 = vector.load %arg7[%c0_20, %c0_21] : memref<2x64xf32, #tpu.memory_space<vmem>>, vector<2x64xf32>
      tpu.vector_store %arg7[%c0_20, %c0_21], %24 {strides = array<i32>} : memref<2x64xf32, #tpu.memory_space<vmem>>, vector<2x64xf32>,
    } else {
    }
    %cst = arith.constant 0.000000e+00 : f32
    %3 = vector.broadcast %cst : f32 to vector<2x64xf32>
    %cst_1 = arith.constant 0xFF800000 : f32
    %4 = vector.broadcast %cst_1 : f32 to vector<2x64xf32>
    %c0_i32_2 = arith.constant 0 : i32
    %c256_i32 = arith.constant 256 : i32
    %5 = arith.muli %c0_i32_2, %c256_i32 : i32
    %6 = tpu.assume_multiple %5, 256 : i32
    %c0 = arith.constant 0 : index
    %c0_3 = arith.constant 0 : index
    %7 = arith.index_cast %6 : i32 to index
    %8 = vector.load %arg2[%c0, %c0_3, %7] : memref<2x64x256xf32, #tpu.memory_space<vmem>>, vector<2x64x256xf32>
    %cst_4 = arith.constant dense<0.000000e+00> : vector<2x64xf32>
    %9 = vector.multi_reduction <add>, %8, %cst_4 [2] : vector<2x64x256xf32> to vector<2x64xf32>
    %10 = arith.addf %3, %9 : vector<2x64xf32>
    %cst_5 = arith.constant dense<0xFF800000> : vector<2x64xf32>
    %11 = vector.multi_reduction <maximumf>, %8, %cst_5 [2] : vector<2x64x256xf32> to vector<2x64xf32>
    %12 = arith.maximumf %4, %11 : vector<2x64xf32>
    %c1_i32 = arith.constant 1 : i32
    %c0_6 = arith.constant 0 : index
    %c0_7 = arith.constant 0 : index
    %13 = vector.load %arg6[%c0_6, %c0_7] : memref<2x64xf32, #tpu.memory_space<vmem>>, vector<2x64xf32>
    %14 = arith.addf %13, %10 : vector<2x64xf32>
    %c0_8 = arith.constant 0 : index
    %c0_9 = arith.constant 0 : index
    %15 = vector.load %arg6[%c0_8, %c0_9] : memref<2x64xf32, #tpu.memory_space<vmem>>, vector<2x64xf32>
    tpu.vector_store %arg6[%c0_8, %c0_9], %14 {strides = array<i32>} : memref<2x64xf32, #tpu.memory_space<vmem>>, vector<2x64xf32>,
    %c0_10 = arith.constant 0 : index
    %c0_11 = arith.constant 0 : index
    %16 = vector.load %arg7[%c0_10, %c0_11] : memref<2x64xf32, #tpu.memory_space<vmem>>, vector<2x64xf32>
    %17 = arith.maximumf %16, %12 : vector<2x64xf32>
    %c0_12 = arith.constant 0 : index
    %c0_13 = arith.constant 0 : index
    %18 = vector.load %arg7[%c0_12, %c0_13] : memref<2x64xf32, #tpu.memory_space<vmem>>, vector<2x64xf32>
    tpu.vector_store %arg7[%c0_12, %c0_13], %17 {strides = array<i32>} : memref<2x64xf32, #tpu.memory_space<vmem>>, vector<2x64xf32>,
    %c0_i32_14 = arith.constant 0 : i32
    %19 = arith.cmpi eq, %arg1, %c0_i32_14 : i32
    %20 = arith.extui %19 : i1 to i32
    %c0_i32_15 = arith.constant 0 : i32
    %21 = arith.cmpi ne, %20, %c0_i32_15 : i32
    scf.if %21 {
      %c0_16 = arith.constant 0 : index
      %c0_17 = arith.constant 0 : index
      %22 = vector.load %arg6[%c0_16, %c0_17] : memref<2x64xf32, #tpu.memory_space<vmem>>, vector<2x64xf32>
      %cst_18 = arith.constant 3.906250e-03 : f32
      %23 = vector.broadcast %cst_18 : f32 to vector<2x64xf32>
      %24 = arith.mulf %22, %23 : vector<2x64xf32>
      %c0_19 = arith.constant 0 : index
      %c0_20 = arith.constant 0 : index
      %25 = vector.load %arg7[%c0_19, %c0_20] : memref<2x64xf32, #tpu.memory_space<vmem>>, vector<2x64xf32>
      %26 = tpu.concatenate %24, %25 in 0 : vector<2x64xf32>, vector<2x64xf32> -> vector<4x64xf32>
      %c0_21 = arith.constant 0 : index
      %c0_22 = arith.constant 0 : index
      %27 = vector.load %arg3[%c0_21, %c0_22] : memref<64x4xf32, #tpu.memory_space<vmem>>, vector<64x4xf32>
      %c0_23 = arith.constant 0 : index
      %c0_24 = arith.constant 0 : index
      %28 = vector.load %arg4[%c0_23, %c0_24] : memref<4x64xf32, #tpu.memory_space<vmem>>, vector<4x64xf32>
      %cst_25 = arith.constant dense<0.000000e+00> : vector<4x4xf32>
      %29 = tpu.matmul %26, %27, %cst_25 {dimension_numbers = #tpu.dot_dimension_numbers<[1], [0], [0], [1], [0, 0, 1, 1], [], []>} : vector<4x64xf32>, vector<64x4xf32>, vector<4x4xf32> -> vector<4x4xf32>
      %cst_26 = arith.constant 0.000000e+00 : f32
      %30 = vector.broadcast %cst_26 : f32 to vector<4x4xf32>
      %31 = arith.maximumf %29, %30 : vector<4x4xf32>
      %cst_27 = arith.constant dense<0.000000e+00> : vector<4x64xf32>
      %32 = tpu.matmul %31, %28, %cst_27 {dimension_numbers = #tpu.dot_dimension_numbers<[1], [0], [0], [1], [0, 0, 1, 1], [], []>} : vector<4x4xf32>, vector<4x64xf32>, vector<4x64xf32> -> vector<4x64xf32>
      %33 = vector.extract_strided_slice %32 {offsets = [0, 0], sizes = [2, 64], strides = [1, 1]} : vector<4x64xf32> to vector<2x64xf32>
      %34 = vector.extract_strided_slice %32 {offsets = [2, 0], sizes = [2, 64], strides = [1, 1]} : vector<4x64xf32> to vector<2x64xf32>
      %35 = arith.addf %33, %34 : vector<2x64xf32>
      %36 = arith.negf %35 : vector<2x64xf32>
      %37 = math.exp %36 : vector<2x64xf32>
      %cst_28 = arith.constant 1.000000e+00 : f32
      %38 = vector.broadcast %cst_28 : f32 to vector<2x64xf32>
      %39 = arith.addf %38, %37 : vector<2x64xf32>
      %40 = arith.divf %38, %39 : vector<2x64xf32>
      %c0_29 = arith.constant 0 : index
      %c0_30 = arith.constant 0 : index
      %41 = vector.load %arg5[%c0_29, %c0_30] : memref<2x64xf32, #tpu.memory_space<vmem>>, vector<2x64xf32>
      tpu.vector_store %arg5[%c0_29, %c0_30], %40 {strides = array<i32>} : memref<2x64xf32, #tpu.memory_space<vmem>>, vector<2x64xf32>,
    } else {
    }
    return
  }
  func.func @transform_0(%arg0: i32, %arg1: i32) -> (i32, i32, i32) {
    %c0_i32 = arith.constant 0 : i32
    %c0_i32_0 = arith.constant 0 : i32
    return %arg0, %c0_i32, %arg1 : i32, i32, i32
  }
  func.func @transform_1(%arg0: i32, %arg1: i32) -> (i32, i32) {
    %c0_i32 = arith.constant 0 : i32
    %c0_i32_0 = arith.constant 0 : i32
    %c0_i32_1 = arith.constant 0 : i32
    return %c0_i32, %c0_i32_0 : i32, i32
  }
  func.func @transform_2(%arg0: i32, %arg1: i32) -> (i32, i32) {
    %c0_i32 = arith.constant 0 : i32
    %c0_i32_0 = arith.constant 0 : i32
    %c0_i32_1 = arith.constant 0 : i32
    return %c0_i32, %c0_i32_0 : i32, i32
  }
  func.func @transform_3(%arg0: i32, %arg1: i32) -> (i32, i32) {
    %c0_i32 = arith.constant 0 : i32
    %c0_i32_0 = arith.constant 0 : i32
    return %arg0, %c0_i32 : i32, i32
  }
}

</mosaic_0001>

<bundles_post_ra>
// kernel: tpu_custom_call.1
= control target key start
LH: loop header
LB: loop body
LE: loop exit
PB: predicated region body
PF: predicated region fallthrough
CT: control target
= control target key end

     0   :  { %8 = vsyncpa [#allocation5], 0  ;;  %s886_s0 = inlined_call_operand.hbm [shape: f32[2,64,256], index: 0, kind: input, shape index: {}]   ;;  %s887_s1 = inlined_call_operand.vmem [shape: f32[64,4], index: 1, kind: input, shape index: {}]   ;;  %s888_s2 = inlined_call_operand.vmem [shape: f32[4,64], index: 2, kind: input, shape index: {}]   ;;  %s889_s3 = inlined_call_operand.hbm [shape: f32[2,64], index: 3, kind: output, shape index: {}]  }
   0x1   :  { %9 = vsyncpa [#allocation6], 0  ;;  %s689_s12 = smov [#allocation4]  }
   0x2   :  { %s15_s13 = sshll.u32 %s689_s12, 4  ;;  %s16_s13 = int_to_ptr.vmem [resolvable:$true] %s15_s13 }
   0x3   :  { %s653_s14 = scalar_lea.vmem %s16_s13, 4096  ;;  %p658_p1 = scmp.lt.s32.totalorder %s16_s13, %s16_s13 }
   0x4   :  { %p654_p0 = scmp.ne.s32.totalorder %s16_s13, %s653_s14  ;;  %p659_p2 = scmp.lt.s32.totalorder %s653_s14, %s653_s14 }
   0x6   :  { %p660_p3 = por %p659_p2, %p658_p1 }
   0x8   :  { %p661_p4 = pnand %p660_p3, %p654_p0 }
   0xa   :  { %664 = shalt.err (!%p661_p4)
}
   0xb   :  { %s690_s15 = smov 256   ;;  %s691_s16 = smov 16  }
   0xc   :  { %21 = dma.hbm_to_vmem [thread:$0]  %s886_s0, 4096, %s16_s13, [#allocation5], %s690_s15, %s690_s15, %s691_s16  }
   0xd   :  { %685 = dma.done.wait [#allocation5], 4096  }
   0xe   :  { %686 = vsyncadd [#allocation5], 4294963200  ;;  %v52_v0 = vld [vmem:[#allocation4 + $0x80] sm:$0xff]  ;;  %v53_v1 = vld [vmem:[#allocation4 + $0x88] sm:$0xff]  ;;  %vm33_vm0 = vcmask 517120   ;;  %vm694_vm1 = vmmov 0  }
   0xf   :  { %v36_v2 = vld [vmem:[#allocation4] sm:$0xff]  ;;  %v92_v3 = vadd.f32 %v53_v1, %v52_v0  ;;  %v37_v4 = vld [vmem:[#allocation4 + $0x8] sm:$0xff]  ;;  %v54_v5 = vld [vmem:[#allocation4 + $0x90] sm:$0xff]  ;;  %v156_v15 = vmax.f32 %v52_v0, %v53_v1  ;;  %v692_v0 = vmov 0.0   ;;  %v693_v1 = vmov -inf   ;;  %s695_s8 = smov [#allocation7]  }
  0x10   :  { %v55_v6 = vld [vmem:[#allocation4 + $0x98] sm:$0xff]  ;;  %v68_v7 = vadd.f32 %v37_v4, %v36_v2  ;;  %v38_v8 = vld [vmem:[#allocation4 + $0x10] sm:$0xff]  ;;  %v132_v13 = vmax.f32 %v36_v2, %v37_v4  ;;  %v56_v16 = vld [vmem:[#allocation4 + $0xa0] sm:$0xff]  ;;  %34 = vst.msk [vmem:[#allocation2] sm:$0x3] %vm33_vm0, %v692_v0  ;;  %610 = vmatprep.subr.mxu0 %v692_v0  ;;  %629 = vmatprep.subr.mxu1 %v692_v0  ;;  %vm208_vm2 = vcmask 130112  }
  0x11   :  { %v39_v9 = vld [vmem:[#allocation4 + $0x18] sm:$0xff]  ;;  %93 = vadd.xlane.f32.xlu1 %v92_v3  ;;  %v95_v10 = vadd.f32 %v55_v6, %v54_v5  ;;  %v159_v14 = vmax.f32 %v54_v5, %v55_v6  ;;  %v57_v17 = vld [vmem:[#allocation4 + $0xa8] sm:$0xff]  ;;  %v40_v18 = vld [vmem:[#allocation4 + $0x20] sm:$0xff]  ;;  %35 = vst.msk [vmem:[#allocation3] sm:$0x3] %vm33_vm0, %v693_v1  ;;  %626 = vmatprep.mubr.msk.f32.mxu0 %vm694_vm1, %v692_v0  ;;  %vm215_vm3 = vcmask 195712  }
  0x12   :  { %69 = vadd.xlane.f32.xlu0 %v68_v7  ;;  %v71_v11 = vadd.f32 %v39_v9, %v38_v8  ;;  %v135_v12 = vmax.f32 %v38_v8, %v39_v9  ;;  %v41_v19 = vld [vmem:[#allocation4 + $0x28] sm:$0xff]  ;;  %v98_v20 = vadd.f32 %v57_v17, %v56_v16  ;;  %v162_v22 = vmax.f32 %v56_v16, %v57_v17  ;;  %v58_v24 = vld [vmem:[#allocation4 + $0xb0] sm:$0xff]  ;;  %v59_v25 = vld [vmem:[#allocation4 + $0xb8] sm:$0xff]  ;;  %s586_s9 = sshll.u32 %s695_s8, 4  ;;  %s587_s9 = int_to_ptr.vmem [resolvable:$true] %s586_s9 }
  0x13   :  { %v74_v21 = vadd.f32 %v41_v19, %v40_v18  ;;  %v138_v23 = vmax.f32 %v40_v18, %v41_v19  ;;  %v42_v26 = vld [vmem:[#allocation4 + $0x30] sm:$0xff]  ;;  %v43_v27 = vld [vmem:[#allocation4 + $0x38] sm:$0xff]  ;;  %v101_v28 = vadd.f32 %v59_v25, %v58_v24  ;;  %v165_v30 = vmax.f32 %v58_v24, %v59_v25  ;;  %v60_v32 = vld [vmem:[#allocation4 + $0xc0] sm:$0xff]  ;;  %631 = vmatprep.mubr.msk.f32.mxu1 %vm694_vm1, %v692_v0  ;;  %p670_p6 = scmp.lt.s32.totalorder %s587_s9, %s587_s9 }
  0x14   :  { %v77_v29 = vadd.f32 %v43_v27, %v42_v26  ;;  %v141_v31 = vmax.f32 %v42_v26, %v43_v27  ;;  %v61_v33 = vld [vmem:[#allocation4 + $0xc8] sm:$0xff]  ;;  %v44_v34 = vld [vmem:[#allocation4 + $0x40] sm:$0xff]  ;;  %v62_v40 = vld [vmem:[#allocation4 + $0xd0] sm:$0xff]  ;;  %v197_v27 = vlaneseq  ;;  %vm222_vm4 = vcmask 261312  }
  0x15   :  { %96 = vadd.xlane.f32.xlu1 %v95_v10  ;;  %v45_v35 = vld [vmem:[#allocation4 + $0x48] sm:$0xff]  ;;  %v104_v36 = vadd.f32 %v61_v33, %v60_v32  ;;  %v168_v38 = vmax.f32 %v60_v32, %v61_v33  ;;  %v63_v41 = vld [vmem:[#allocation4 + $0xd8] sm:$0xff]  ;;  %v46_v42 = vld [vmem:[#allocation4 + $0x50] sm:$0xff]  ;;  %vm229_vm5 = vcmask 326912   ;;  %vm236_vm6 = vcmask 392512  }
  0x16   :  { %72 = vadd.xlane.f32.xlu0 %v71_v11  ;;  %v80_v37 = vadd.f32 %v45_v35, %v44_v34  ;;  %v144_v39 = vmax.f32 %v44_v34, %v45_v35  ;;  %v47_v43 = vld [vmem:[#allocation4 + $0x58] sm:$0xff]  ;;  %v107_v44 = vadd.f32 %v63_v41, %v62_v40  ;;  %v171_v46 = vmax.f32 %v62_v40, %v63_v41  ;;  %v64_v48 = vld [vmem:[#allocation4 + $0xe0] sm:$0xff]  ;;  %v65_v49 = vld [vmem:[#allocation4 + $0xe8] sm:$0xff] }
  0x17   :  { %v83_v45 = vadd.f32 %v47_v43, %v46_v42  ;;  %v147_v47 = vmax.f32 %v46_v42, %v47_v43  ;;  %v48_v50 = vld [vmem:[#allocation4 + $0x60] sm:$0xff]  ;;  %v49_v51 = vld [vmem:[#allocation4 + $0x68] sm:$0xff]  ;;  %v110_v52 = vadd.f32 %v65_v49, %v64_v48  ;;  %v174_v54 = vmax.f32 %v64_v48, %v65_v49  ;;  %v66_v56 = vld [vmem:[#allocation4 + $0xf0] sm:$0xff] }
  0x18   :  { %v86_v53 = vadd.f32 %v49_v51, %v48_v50  ;;  %v150_v55 = vmax.f32 %v48_v50, %v49_v51  ;;  %v67_v57 = vld [vmem:[#allocation4 + $0xf8] sm:$0xff]  ;;  %v50_v58 = vld [vmem:[#allocation4 + $0x70] sm:$0xff]  ;;  %v412_v4 = vld [vmem:[%s887_s1 + $0x28] sm:$0xff]  ;;  %v200_v33 = vshrl.u32 %v197_v27, 7  ;;  %vm243_vm7 = vcmask 458112  }
  0x19   :  { %136 = vmax.xlane.f32.xlu1 %v135_v12  ;;  %v51_v59 = vld [vmem:[#allocation4 + $0x78] sm:$0xff]  ;;  %v113_v60 = vadd.f32 %v67_v57, %v66_v56  ;;  %v177_v62 = vmax.f32 %v66_v56, %v67_v57  ;;  %v413_v3 = vld [vmem:[%s887_s1 + $0x30] sm:$0xff]  ;;  %v408_v8 = vld [vmem:[%s887_s1 + $0x8] sm:$0xff]  ;;  %vm250_vm8 = vcmask 523712   ;;  %vm291_vm9 = vcmask 1041409  }
  0x1a   :  { %133 = vmax.xlane.f32.xlu0 %v132_v13  ;;  %v89_v61 = vadd.f32 %v51_v59, %v50_v58  ;;  %v153_v63 = vmax.f32 %v50_v58, %v51_v59  ;;  %v414_v2 = vld [vmem:[%s887_s1 + $0x38] sm:$0xff]  ;;  %v411_v5 = vld [vmem:[%s887_s1 + $0x20] sm:$0xff]  ;;  %v409_v7 = vld [vmem:[%s887_s1 + $0x10] sm:$0xff]  ;;  %vm405_vm10 = vcmask 1041408   ;;  %vm416_vm11 = vcmask 523264  }
  0x1b   :  { %611 = vmatpush3.msra.mxu0 %v414_v2  ;;  %v410_v6 = vld [vmem:[%s887_s1 + $0x18] sm:$0xff]  ;;  %v407_v9 = vld [vmem:[%s887_s1] sm:$0xff]  ;;  %vm495_vm12 = vcmask 1043456   ;;  %vm491_vm13 = vcmask 31744  }
  0x1c   :  { %612 = vmatprep.subr.mxu0 %v692_v0 }
  0x1d   :  { %160 = vmax.xlane.f32.xlu1 %v159_v14  ;;  %613 = vmatpush3.msra.mxu0 %v413_v3 }
  0x1e   :  { %157 = vmax.xlane.f32.xlu0 %v156_v15  ;;  %614 = vmatprep.subr.mxu0 %v692_v0 }
  0x1f   :  { %615 = vmatpush3.msra.mxu0 %v412_v4 }
  0x20   :  { %616 = vmatprep.subr.mxu0 %v692_v0 }
  0x21   :  { %99 = vadd.xlane.f32.xlu1 %v98_v20  ;;  %617 = vmatpush3.msra.mxu0 %v411_v5 }
  0x22   :  { %75 = vadd.xlane.f32.xlu0 %v74_v21  ;;  %618 = vmatprep.subr.mxu0 %v692_v0 }
  0x23   :  { %619 = vmatpush3.msra.mxu0 %v410_v6 }
  0x24   :  { %620 = vmatprep.subr.mxu0 %v692_v0 }
  0x25   :  { %163 = vmax.xlane.f32.xlu1 %v162_v22  ;;  %621 = vmatpush3.msra.mxu0 %v409_v7 }
  0x26   :  { %139 = vmax.xlane.f32.xlu0 %v138_v23  ;;  %622 = vmatprep.subr.mxu0 %v692_v0 }
  0x27   :  { %623 = vmatpush3.msra.mxu0 %v408_v8 }
  0x28   :  { %624 = vmatprep.subr.mxu0 %v692_v0 }
  0x29   :  { %102 = vadd.xlane.f32.xlu1 %v101_v28  ;;  %625 = vmatpush3.msra.mxu0 %v407_v9 }
  0x2a   :  { %78 = vadd.xlane.f32.xlu0 %v77_v29 }
  0x2d   :  { %166 = vmax.xlane.f32.xlu1 %v165_v30  ;;  %v198_v30 = vand.u32 127, %v197_v27 }
  0x2e   :  { %142 = vmax.xlane.f32.xlu0 %v141_v31 }
  0x2f   :  { %v203_v32 = vadd.s32 4294967288, %v198_v30  ;;  %v210_v34 = vadd.s32 4294967280, %v198_v30  ;;  %v238_v40 = vadd.s32 4294967248, %v198_v30  ;;  %v245_v42 = vadd.s32 4294967240, %v198_v30 }
  0x30   :  { %v201_v43 = vsub.s32 %v198_v30, %v200_v33 }
  0x31   :  { %105 = vadd.xlane.f32.xlu1 %v104_v36  ;;  %v217_v36 = vadd.s32 4294967272, %v198_v30  ;;  %v206_v41 = vsub.s32 %v203_v32, %v200_v33  ;;  %v799_v50 = vsub.s32 %v238_v40, %v200_v33 }
  0x32   :  { %81 = vadd.xlane.f32.xlu0 %v80_v37  ;;  %v224_v37 = vadd.s32 4294967264, %v198_v30 }
  0x35   :  { %169 = vmax.xlane.f32.xlu1 %v168_v38 }
  0x36   :  { %145 = vmax.xlane.f32.xlu0 %v144_v39  ;;  %v231_v39 = vadd.s32 4294967256, %v198_v30 }
  0x38   :  { %v797_v49 = vsub.s32 %v231_v39, %v200_v33 }
  0x39   :  { %108 = vadd.xlane.f32.xlu1 %v107_v44  ;;  %v213_v44 = vsub.s32 %v210_v34, %v200_v33 }
  0x3a   :  { %84 = vadd.xlane.f32.xlu0 %v83_v45 }
  0x3d   :  { %172 = vmax.xlane.f32.xlu1 %v171_v46  ;;  %v791_v46 = vsub.s32 %v217_v36, %v200_v33 }
  0x3e   :  { %148 = vmax.xlane.f32.xlu0 %v147_v47  ;;  %v793_v47 = vsub.s32 %v224_v37, %v200_v33 }
  0x41   :  { %111 = vadd.xlane.f32.xlu1 %v110_v52 }
  0x42   :  { %87 = vadd.xlane.f32.xlu0 %v86_v53  ;;  %v803_v53 = vsub.s32 %v245_v42, %v200_v33  ;;  %v180_v42 = vld [vmem:[#allocation2] sm:$0x3] }
  0x45   :  { %175 = vmax.xlane.f32.xlu1 %v174_v54 }
  0x46   :  { %151 = vmax.xlane.f32.xlu0 %v150_v55 }
  0x49   :  { %114 = vadd.xlane.f32.xlu1 %v113_v60 }
  0x4a   :  { %90 = vadd.xlane.f32.xlu0 %v89_v61 }
  0x4d   :  { %178 = vmax.xlane.f32.xlu1 %v177_v62 }
  0x4e   :  { %154 = vmax.xlane.f32.xlu0 %v153_v63 }
  0x9a   :  { %v745_v10 = vpop.xlane.xlu1 %93 }
  0x9b   :  { %v747_v11 = vpop.xlane.xlu0 %69  ;;  %v255_v59 = vrot.slane %v745_v10, %v201_v43 }
  0x9c   :  { %v202_v60 = vrot.slane %v747_v11, %v201_v43 }
  0x9e   :  { %v749_v12 = vpop.xlane.xlu1 %96 }
  0x9f   :  { %v751_v13 = vpop.xlane.xlu0 %72  ;;  %v259_v51 = vrot.slane %v749_v12, %v206_v41 }
  0xa0   :  { %v207_v52 = vrot.slane %v751_v13, %v206_v41 }
  0xa1   :  { %v260_v3 = vsel %vm208_vm2, %v259_v51, %v255_v59  ;;  %v297_v59 = vld [vmem:[#allocation3] sm:$0x3] }
  0xa2   :  { %v753_v14 = vpop.xlane.xlu1 %136  ;;  %v209_v4 = vsel %vm208_vm2, %v207_v52, %v202_v60 }
  0xa3   :  { %v755_v15 = vpop.xlane.xlu0 %133  ;;  %v321_v54 = vrot.slane %v753_v14, %v206_v41 }
  0xa4   :  { %v317_v55 = vrot.slane %v755_v15, %v201_v43 }
  0xa6   :  { %v757_v16 = vpop.xlane.xlu1 %160  ;;  %v322_v6 = vsel %vm208_vm2, %v321_v54, %v317_v55 }
  0xa7   :  { %v759_v17 = vpop.xlane.xlu0 %157  ;;  %v360_v56 = vrot.slane %v757_v16, %v206_v41 }
  0xa8   :  { %v356_v57 = vrot.slane %v759_v17, %v201_v43 }
  0xaa   :  { %v761_v18 = vpop.xlane.xlu1 %99  ;;  %v361_v7 = vsel %vm208_vm2, %v360_v56, %v356_v57 }
  0xab   :  { %v763_v19 = vpop.xlane.xlu0 %75  ;;  %v264_v61 = vrot.slane %v761_v18, %v213_v44 }
  0xac   :  { %v214_v62 = vrot.slane %v763_v19, %v213_v44 }
  0xad   :  { %v265_v11 = vsel %vm215_vm3, %v264_v61, %v260_v3  ;;  %v415_v3 = vld [vmem:[%s888_s2] sm:$0xf]  ;;  %s665_s2 = scalar_lea.vmem %s587_s9, 32 }
  0xae   :  { %v765_v20 = vpop.xlane.xlu1 %163  ;;  %v216_v12 = vsel %vm215_vm3, %v214_v62, %v209_v4  ;;  %630 = vmatpush3.msk.msra.mxu1 %vm495_vm12, %v415_v3  ;;  %p666_p5 = scmp.ne.s32.totalorder %s587_s9, %s665_s2  ;;  %p671_p7 = scmp.lt.s32.totalorder %s665_s2, %s665_s2 }
  0xaf   :  { %v767_v21 = vpop.xlane.xlu0 %139  ;;  %v365_v0 = vrot.slane %v765_v20, %v213_v44 }
  0xb0   :  { %v326_v1 = vrot.slane %v767_v21, %v213_v44  ;;  %p672_p8 = por %p671_p7, %p670_p6 }
  0xb1   :  { %v366_v16 = vsel %vm215_vm3, %v365_v0, %v361_v7 }
  0xb2   :  { %v769_v22 = vpop.xlane.xlu1 %102  ;;  %v327_v17 = vsel %vm215_vm3, %v326_v1, %v322_v6  ;;  %p673_p9 = pnand %p672_p8, %p666_p5 }
  0xb3   :  { %v771_v23 = vpop.xlane.xlu0 %78  ;;  %v269_v2 = vrot.slane %v769_v22, %v791_v46 }
  0xb4   :  { %v221_v5 = vrot.slane %v771_v23, %v791_v46 }
  0xb5   :  { %v270_v18 = vsel %vm222_vm4, %v269_v2, %v265_v11 }
  0xb6   :  { %v773_v24 = vpop.xlane.xlu1 %166  ;;  %v223_v20 = vsel %vm222_vm4, %v221_v5, %v216_v12 }
  0xb7   :  { %v775_v25 = vpop.xlane.xlu0 %142  ;;  %v370_v21 = vrot.slane %v773_v24, %v791_v46 }
  0xb8   :  { %v331_v22 = vrot.slane %v775_v25, %v791_v46 }
  0xba   :  { %v777_v26 = vpop.xlane.xlu1 %105  ;;  %v332_v43 = vsel %vm222_vm4, %v331_v22, %v327_v17 }
  0xbb   :  { %v779_v28 = vpop.xlane.xlu0 %81  ;;  %v274_v8 = vrot.slane %v777_v26, %v793_v47 }
  0xbc   :  { %v228_v9 = vrot.slane %v779_v28, %v793_v47 }
  0xbd   :  { %v275_v26 = vsel %vm229_vm5, %v274_v8, %v270_v18 }
  0xbe   :  { %v781_v29 = vpop.xlane.xlu1 %169  ;;  %v230_v27 = vsel %vm229_vm5, %v228_v9, %v223_v20 }
  0xbf   :  { %v783_v31 = vpop.xlane.xlu0 %145  ;;  %v375_v28 = vrot.slane %v781_v29, %v793_v47 }
  0xc0   :  { %v336_v30 = vrot.slane %v783_v31, %v793_v47 }
  0xc2   :  { %v785_v35 = vpop.xlane.xlu1 %108  ;;  %v337_v47 = vsel %vm229_vm5, %v336_v30, %v332_v43 }
  0xc3   :  { %v787_v38 = vpop.xlane.xlu0 %84  ;;  %v279_v13 = vrot.slane %v785_v35, %v797_v49 }
  0xc4   :  { %v235_v14 = vrot.slane %v787_v38, %v797_v49  ;;  %v371_v38 = vsel %vm222_vm4, %v370_v21, %v366_v16 }
  0xc5   :  { %v280_v33 = vsel %vm236_vm6, %v279_v13, %v275_v26  ;;  %v376_v44 = vsel %vm229_vm5, %v375_v28, %v371_v38 }
  0xc6   :  { %v789_v45 = vpop.xlane.xlu1 %172  ;;  %v237_v24 = vsel %vm236_vm6, %v235_v14, %v230_v27 }
  0xc7   :  { %v795_v48 = vpop.xlane.xlu0 %148  ;;  %v380_v25 = vrot.slane %v789_v45, %v797_v49 }
  0xc8   :  { %v341_v36 = vrot.slane %v795_v48, %v797_v49 }
  0xc9   :  { %v381_v48 = vsel %vm236_vm6, %v380_v25, %v376_v44 }
  0xca   :  { %v112_v58 = vpop.xlane.xlu1 %111 }
  0xcb   :  { %v88_v63 = vpop.xlane.xlu0 %87  ;;  %v284_v19 = vrot.slane %v112_v58, %v799_v50 }
  0xcc   :  { %v242_v23 = vrot.slane %v88_v63, %v799_v50 }
  0xcd   :  { %v285_v37 = vsel %vm243_vm7, %v284_v19, %v280_v33 }
  0xce   :  { %v176_v10 = vpop.xlane.xlu1 %175  ;;  %v244_v39 = vsel %vm243_vm7, %v242_v23, %v237_v24 }
  0xcf   :  { %v152_v15 = vpop.xlane.xlu0 %151  ;;  %v385_v29 = vrot.slane %v176_v10, %v799_v50 }
  0xd0   :  { %v346_v40 = vrot.slane %v152_v15, %v799_v50  ;;  %v342_v50 = vsel %vm236_vm6, %v341_v36, %v337_v47 }
  0xd1   :  { %v386_v54 = vsel %vm243_vm7, %v385_v29, %v381_v48 }
  0xd2   :  { %v115_v32 = vpop.xlane.xlu1 %114  ;;  %v347_v57 = vsel %vm243_vm7, %v346_v40, %v342_v50 }
  0xd3   :  { %v289_v34 = vrot.slane %v115_v32, %v803_v53  ;;  %v91_v35 = vpop.xlane.xlu0 %90 }
  0xd4   :  { %v249_v31 = vrot.slane %v91_v35, %v803_v53 }
  0xd5   :  { %v290_v41 = vsel %vm250_vm8, %v289_v34, %v285_v37 }
  0xd6   :  { %v251_v45 = vsel %vm250_vm8, %v249_v31, %v244_v39  ;;  %v179_v46 = vpop.xlane.xlu1 %178 }
  0xd7   :  { %v292_v49 = vsel %vm291_vm9, %v290_v41, %v251_v45  ;;  %v390_v51 = vrot.slane %v179_v46, %v803_v53  ;;  %v155_v52 = vpop.xlane.xlu0 %154 }
  0xd8   :  { %v294_v55 = vadd.f32 %v292_v49, %v180_v42  ;;  %v351_v56 = vrot.slane %v155_v52, %v803_v53 }
  0xd9   :  { %v391_v58 = vsel %vm250_vm8, %v390_v51, %v386_v54 }
  0xda   :  { %296 = vst.msk [vmem:[#allocation2] sm:$0x3] %vm33_vm0, %v294_v55  ;;  %v352_v60 = vsel %vm250_vm8, %v351_v56, %v347_v57 }
  0xdb   :  { %v392_v61 = vsel %vm291_vm9, %v391_v58, %v352_v60 }
  0xdc   :  { %v394_v62 = vmax.f32 %v297_v59, %v392_v61 }
  0xde   :  { %395 = vst.msk [vmem:[#allocation3] sm:$0x3] %vm33_vm0, %v394_v62 }
  0xe1   :  { %v399_v63 = vld [vmem:[#allocation2] sm:$0x3] }
  0xe2   :  { %v400_v1 = vmul.f32 0.00390625, %v399_v63 }
  0xe5   :  { %v401_v0 = vld [vmem:[#allocation3] sm:$0x3] }
  0xe6   :  { %v403_v2 = vrot.slane %v401_v0, 6 }
  0xe8   :  { %v406_v53 = vsel %vm405_vm10, %v400_v1, %v403_v2 }
  0xe9   :  { %627 = vmatmul.mubr.msk.f32.vlgmr.msra.gmra.mxu0 %vm416_vm11, %v406_v53 }
 0x1a9   :  { %v486_v4 = vpop.f32.mrf.mxu0 }
 0x1aa   :  { %v490_v5 = vmax.f32 %v486_v4, 0.0 }
 0x1ab   :  { %v628_v6 = vpop.f32.mrf.mxu0 }
 0x1ac   :  { %632 = vmatmul.mubr.msk.f32.vlgmr.msra.gmra.mxu1 %vm491_vm13, %v490_v5 }
 0x26c   :  { %v565_v7 = vpop.f32.mrf.mxu1 }
 0x26d   :  { %v570_v8 = vrot.slane %v565_v7, 2 }
 0x26e   :  { %v633_v9 = vpop.f32.mrf.mxu1 }
 0x26f   :  { %v572_v10 = vadd.f32 %v570_v8, %v565_v7 }
 0x271   :  { %v598_v11 = vmul.f32 -1.442695, %v572_v10 }
 0x273   :  { %641 = vpow2.f32 %v598_v11 }
 0x280   :  { %v642_v12 = vpop.eup %641 }
 0x281   :  { %v576_v13 = vadd.f32 1.0, %v642_v12 }
 0x283   :  { %643 = vrcp.f32 %v576_v13 }
 0x290   :  { %v644_v14 = vpop.eup %643 }
 0x291   :  { %579 = vst.msk [vmem:[#allocation7] sm:$0x3] %vm33_vm0, %v644_v14 }
 0x292   :  { %676 = shalt.err (!%p673_p9)
}
 0x293   :  { %589 = dma.vmem_to_hbm [thread:$0]  %s587_s9, 32, %s889_s3, [#allocation6]  }
 0x294   :  { %687 = dma.done.wait [#allocation6], 32  }
 0x295   :  { %688 = vsyncadd [#allocation6], 4294967264 }
 0x296   :  { %593 = vsyncpa [#allocation5], 1 }
 0x297   :  { %594 = vsyncpa [#allocation6], 1 }

</bundles_post_ra>
